<compile_context>
chip_gen: v7x
topology: tpu7x:2x2x1
jax: 0.10.0
libtpu: 0.0.40
codegen_flags: <defaults>
</compile_context>

<pallas_src>
import functools

import jax
import jax.numpy as jnp
from jax.experimental import pallas as pl
from jax.experimental.pallas import tpu as pltpu


def _avg_user_kernel(x_ref, o_ref, *, inv_s):
    # x_ref: (TB, S, D) VMEM tile ; o_ref: (TB, D) VMEM tile (lane/sublane dense)
    # Sum over the history axis with f32 accumulation, then scale by 1/S.
    acc = jnp.sum(x_ref[...], axis=1, dtype=jnp.float32)
    o_ref[...] = (acc * inv_s).astype(o_ref.dtype)


def _round_up(x: int, m: int) -> int:
    return ((x + m - 1) // m) * m


def avg_user_encoder(news_embedding: jax.Array,
                     *, target_tile_bytes: int = 4 * 1024 * 1024) -> jax.Array:
    """Pallas equivalent of AvgUserEncoder.forward.

    Args:
        news_embedding: [B, S, D]
    Returns:
        user_embedding: [B, 1, D]
    """
    B, S, D = news_embedding.shape
    dtype = news_embedding.dtype
    itemsize = jnp.dtype(dtype).itemsize

    # --- pad hidden dim up to a lane multiple (128) so loads/stores are unmasked ---
    D_pad = _round_up(D, 128)

    # --- choose batch tile TB: multiple of 8 (sublane-dense output), ---
    # --- sized so one input tile is ~target_tile_bytes (works on all gens) ---
    row_bytes = S * D_pad * itemsize
    TB = max(8, (target_tile_bytes // max(row_bytes, 1)) // 8 * 8)
    # keep at least a few grid steps when B is large (megacore sharding on v7x)
    TB = min(TB, max(8, _round_up(pl.cdiv(B, 4), 8)))

    B_pad = _round_up(B, TB)
    grid = B_pad // TB

    x = news_embedding
    if B_pad != B or D_pad != D:
        # zero padding: padded rows/columns produce zeros and are sliced away
        x = jnp.pad(x, ((0, B_pad - B), (0, 0), (0, D_pad - D)))

    kernel = functools.partial(_avg_user_kernel, inv_s=1.0 / S)

    out2d = pl.pallas_call(
        kernel,
        out_shape=jax.ShapeDtypeStruct((B_pad, D_pad), dtype),
        grid_spec=pltpu.PrefetchScalarGridSpec(
            num_scalar_prefetch=0,
            grid=(grid,),
            in_specs=[pl.BlockSpec((TB, S, D_pad), lambda b: (b, 0, 0))],
            out_specs=pl.BlockSpec((TB, D_pad), lambda b: (b, 0)),
        ),
        compiler_params=pltpu.CompilerParams(
            dimension_semantics=("parallel",),
            vmem_limit_bytes=32 * 1024 * 1024,
        ),
    )(x)

    # drop padding and restore the keepdim axis (both are free layout ops)
    return out2d[:B, :D].reshape(B, 1, D)


if __name__ == "__main__":
    # AvgUserEncoder has no parameters; nothing to initialize beyond inputs.
    key = jax.random.PRNGKey(0)
    batch, his_size, hidden = 2, 8, 128  # hidden=128 keeps D lane-aligned
    news_embedding = jax.random.normal(
        key, (batch, his_size, hidden), dtype=jnp.float32
    )

    out = avg_user_encoder(news_embedding)
    jax.block_until_ready(out)

    # sanity check against plain JAX reference (same semantics as torch .mean)
    ref = jnp.mean(news_embedding, axis=-2, keepdims=True)
    assert out.shape == (batch, 1, hidden), out.shape
    assert jnp.allclose(out, ref, atol=1e-5, rtol=1e-5), "mismatch vs reference"

    # also exercise the padding path (non-multiple batch / hidden)
    x2 = jax.random.normal(key, (3, 5, 96), dtype=jnp.float32)
    out2 = avg_user_encoder(x2)
    jax.block_until_ready(out2)
    ref2 = jnp.mean(x2, axis=-2, keepdims=True)
    assert out2.shape == (3, 1, 96), out2.shape
    assert jnp.allclose(out2, ref2, atol=1e-5, rtol=1e-5), "mismatch (padded path)"

    print("KERNEL_OK")
</pallas_src>

<mosaic_0001>
module attributes {stable_mosaic.version = 11 : i64} {
  func.func @_avg_user_kernel(%arg0: i32, %arg1: memref<8x8x128xf32, #tpu.memory_space<vmem>>, %arg2: memref<8x128xf32, #tpu.memory_space<vmem>>) attributes {dimension_semantics = [#tpu.dimension_semantics<parallel>], iteration_bounds = array<i64: 1>, scalar_prefetch = 0 : i64, scratch_operands = 0 : i64, tpu.core_type = #tpu.core_type<tc>, window_params = [{transform_indices = @transform_0, window_bounds = array<i64: 8, 8, 128>}, {transform_indices = @transform_1, window_bounds = array<i64: 8, 128>}]} {
    %c0 = arith.constant 0 : index
    %c0_0 = arith.constant 0 : index
    %c0_1 = arith.constant 0 : index
    %0 = vector.load %arg1[%c0, %c0_0, %c0_1] : memref<8x8x128xf32, #tpu.memory_space<vmem>>, vector<8x8x128xf32>
    %cst = arith.constant dense<0.000000e+00> : vector<8x128xf32>
    %1 = vector.multi_reduction <add>, %0, %cst [1] : vector<8x8x128xf32> to vector<8x128xf32>
    %cst_2 = arith.constant 1.250000e-01 : f32
    %2 = vector.broadcast %cst_2 : f32 to vector<8x128xf32>
    %3 = arith.mulf %1, %2 : vector<8x128xf32>
    %c0_3 = arith.constant 0 : index
    %c0_4 = arith.constant 0 : index
    %4 = vector.load %arg2[%c0_3, %c0_4] : memref<8x128xf32, #tpu.memory_space<vmem>>, vector<8x128xf32>
    tpu.vector_store %arg2[%c0_3, %c0_4], %3 {strides = array<i32>} : memref<8x128xf32, #tpu.memory_space<vmem>>, vector<8x128xf32>,
    return
  }
  func.func @transform_0(%arg0: i32) -> (i32, i32, i32) {
    %c0_i32 = arith.constant 0 : i32
    %c0_i32_0 = arith.constant 0 : i32
    %c0_i32_1 = arith.constant 0 : i32
    return %arg0, %c0_i32, %c0_i32_0 : i32, i32, i32
  }
  func.func @transform_1(%arg0: i32) -> (i32, i32) {
    %c0_i32 = arith.constant 0 : i32
    %c0_i32_0 = arith.constant 0 : i32
    return %arg0, %c0_i32 : i32, i32
  }
}

</mosaic_0001>

<bundles_post_ra>
// kernel: tpu_custom_call.1
= control target key start
LH: loop header
LB: loop body
LE: loop exit
PB: predicated region body
PF: predicated region fallthrough
CT: control target
= control target key end

     0   :  { %6 = vsyncpa [#allocation3], 0  ;;  %s218_s0 = inlined_call_operand.hbm [shape: f32[8,8,128], index: 0, kind: input, shape index: {}]   ;;  %s219_s1 = inlined_call_operand.hbm [shape: f32[8,128], index: 1, kind: output, shape index: {}]  }
   0x1   :  { %7 = vsyncpa [#allocation4], 0  ;;  %s178_s6 = smov [#allocation2]   ;;  %s130_s10 = scalar_lea.hbm %s218_s0, 1024 }
   0x2   :  { %s13_s7 = sshll.u32 %s178_s6, 4  ;;  %p131_p0 = scmp.ne.s32.totalorder %s218_s0, %s130_s10  ;;  %s14_s7 = int_to_ptr.vmem [resolvable:$true] %s13_s7 }
   0x3   :  { %p134_p1 = scmp.lt.u32.totalorder %s130_s10, %s218_s0 }
   0x5   :  { %p136_p2 = pnand %p134_p1, %p131_p0 }
   0x7   :  { %139 = shalt.err (!%p136_p2)
}
   0x8   :  { %s140_s15 = scalar_lea.vmem %s14_s7, 1024  ;;  %p145_p4 = scmp.lt.s32.totalorder %s14_s7, %s14_s7 }
   0x9   :  { %p141_p3 = scmp.ne.s32.totalorder %s14_s7, %s140_s15  ;;  %p146_p5 = scmp.lt.s32.totalorder %s140_s15, %s140_s15 }
   0xb   :  { %p147_p6 = por %p146_p5, %p145_p4 }
   0xd   :  { %p148_p7 = pnand %p147_p6, %p141_p3 }
   0xf   :  { %151 = shalt.err (!%p148_p7)
}
  0x10   :  { %s179_s16 = smov 128   ;;  %s180_s17 = smov 8  }
  0x11   :  { %19 = dma.hbm_to_vmem [thread:$0]  %s218_s0, 1024, %s14_s7, [#allocation3], %s179_s16, %s179_s16, %s180_s17  }
  0x12   :  { %174 = dma.done.wait [#allocation3], 1024  }
  0x13   :  { %175 = vsyncadd [#allocation3], 4294966272  ;;  %v23_v0 = vld [vmem:[#allocation2] sm:$0xff]  ;;  %v24_v1 = vld [vmem:[#allocation2 + $0x8] sm:$0xff]  ;;  %vm95_vm0 = vcmask 1041409   ;;  %vm97_vm1 = vcmask 1042434  }
  0x14   :  { %v25_v2 = vld [vmem:[#allocation2 + $0x10] sm:$0xff]  ;;  %v26_v3 = vld [vmem:[#allocation2 + $0x18] sm:$0xff]  ;;  %v27_v4 = vld [vmem:[#allocation2 + $0x20] sm:$0xff]  ;;  %v31_v6 = vrot.slane %v23_v0, 4  ;;  %v37_v7 = vrot.slane %v24_v1, 4  ;;  %vm99_vm2 = vcmask 1043459  }
  0x15   :  { %v28_v5 = vld [vmem:[#allocation2 + $0x28] sm:$0xff]  ;;  %v43_v8 = vrot.slane %v25_v2, 4  ;;  %v29_v9 = vld [vmem:[#allocation2 + $0x30] sm:$0xff]  ;;  %v30_v10 = vld [vmem:[#allocation2 + $0x38] sm:$0xff]  ;;  %v49_v11 = vrot.slane %v26_v3, 4  ;;  %v55_v12 = vrot.slane %v27_v4, 4 }
  0x16   :  { %v61_v13 = vrot.slane %v28_v5, 4  ;;  %v32_v14 = vadd.f32 %v31_v6, %v23_v0  ;;  %v38_v15 = vadd.f32 %v37_v7, %v24_v1  ;;  %v67_v17 = vrot.slane %v29_v9, 4  ;;  %s181_s0 = smov [#allocation5]  }
  0x17   :  { %v44_v16 = vadd.f32 %v43_v8, %v25_v2  ;;  %v50_v18 = vadd.f32 %v49_v11, %v26_v3  ;;  %v56_v19 = vadd.f32 %v55_v12, %v27_v4  ;;  %v73_v21 = vrot.slane %v30_v10, 4  ;;  %s117_s20 = sshll.u32 %s181_s0, 4  ;;  %s118_s20 = int_to_ptr.vmem [resolvable:$true] %s117_s20 }
  0x18   :  { %v62_v20 = vadd.f32 %v61_v13, %v28_v5  ;;  %v33_v22 = vrot.slane %v32_v14, 2  ;;  %v39_v23 = vrot.slane %v38_v15, 2  ;;  %v68_v25 = vadd.f32 %v67_v17, %v29_v9  ;;  %s152_s21 = scalar_lea.vmem %s118_s20, 128  ;;  %p157_p9 = scmp.lt.s32.totalorder %s118_s20, %s118_s20 }
  0x19   :  { %v45_v24 = vrot.slane %v44_v16, 2  ;;  %v51_v26 = vrot.slane %v50_v18, 2  ;;  %v57_v27 = vrot.slane %v56_v19, 2  ;;  %v74_v29 = vadd.f32 %v73_v21, %v30_v10  ;;  %p153_p8 = scmp.ne.s32.totalorder %s118_s20, %s152_s21  ;;  %p158_p10 = scmp.lt.s32.totalorder %s152_s21, %s152_s21 }
  0x1a   :  { %v63_v28 = vrot.slane %v62_v20, 2  ;;  %v34_v30 = vadd.f32 %v33_v22, %v32_v14  ;;  %v40_v31 = vadd.f32 %v39_v23, %v38_v15  ;;  %v69_v33 = vrot.slane %v68_v25, 2 }
  0x1b   :  { %v46_v32 = vadd.f32 %v45_v24, %v44_v16  ;;  %v52_v34 = vadd.f32 %v51_v26, %v50_v18  ;;  %v58_v35 = vadd.f32 %v57_v27, %v56_v19  ;;  %v75_v37 = vrot.slane %v74_v29, 2  ;;  %p159_p11 = por %p158_p10, %p157_p9 }
  0x1c   :  { %v64_v36 = vadd.f32 %v63_v28, %v62_v20  ;;  %v35_v38 = vrot.slane %v34_v30, 1  ;;  %v41_v39 = vrot.slane %v40_v31, 1  ;;  %v70_v41 = vadd.f32 %v69_v33, %v68_v25 }
  0x1d   :  { %v47_v40 = vrot.slane %v46_v32, 1  ;;  %v53_v42 = vrot.slane %v52_v34, 1  ;;  %v59_v43 = vrot.slane %v58_v35, 1  ;;  %v76_v45 = vadd.f32 %v75_v37, %v74_v29  ;;  %p160_p12 = pnand %p159_p11, %p153_p8 }
  0x1e   :  { %v65_v44 = vrot.slane %v64_v36, 1  ;;  %v36_v46 = vadd.f32 %v35_v38, %v34_v30  ;;  %v42_v47 = vadd.f32 %v41_v39, %v40_v31  ;;  %v71_v49 = vrot.slane %v70_v41, 1 }
  0x1f   :  { %v48_v48 = vadd.f32 %v47_v40, %v46_v32  ;;  %v54_v50 = vadd.f32 %v53_v42, %v52_v34  ;;  %v60_v51 = vadd.f32 %v59_v43, %v58_v35  ;;  %v77_v53 = vrot.slane %v76_v45, 1 }
  0x20   :  { %v66_v52 = vadd.f32 %v65_v44, %v64_v36  ;;  %v72_v54 = vadd.f32 %v71_v49, %v70_v41  ;;  %v79_v55 = vmul.f32 0.125, %v36_v46  ;;  %v80_v56 = vmul.f32 0.125, %v42_v47 }
  0x21   :  { %v81_v57 = vmul.f32 0.125, %v48_v48  ;;  %v78_v58 = vadd.f32 %v77_v53, %v76_v45  ;;  %v82_v59 = vmul.f32 0.125, %v54_v50  ;;  %v83_v60 = vmul.f32 0.125, %v60_v51 }
  0x22   :  { %v84_v61 = vmul.f32 0.125, %v66_v52  ;;  %v96_v62 = vsel %vm95_vm0, %v80_v56, %v79_v55  ;;  %vm101_vm3 = vcmask 1044484   ;;  %v85_v63 = vmul.f32 0.125, %v72_v54 }
  0x23   :  { %v98_v0 = vsel %vm97_vm1, %v81_v57, %v96_v62  ;;  %vm103_vm4 = vcmask 1045509   ;;  %v86_v1 = vmul.f32 0.125, %v78_v58  ;;  %vm105_vm5 = vcmask 1046534  }
  0x24   :  { %v100_v2 = vsel %vm99_vm2, %v82_v59, %v98_v0  ;;  %vm107_vm6 = vcmask 1047559  }
  0x25   :  { %v102_v3 = vsel %vm101_vm3, %v83_v60, %v100_v2 }
  0x26   :  { %v104_v4 = vsel %vm103_vm4, %v84_v61, %v102_v3 }
  0x27   :  { %v106_v5 = vsel %vm105_vm5, %v85_v63, %v104_v4 }
  0x28   :  { %v108_v6 = vsel %vm107_vm6, %v86_v1, %v106_v5 }
  0x29   :  { %110 = vst [vmem:[#allocation5] sm:$0xff] %v108_v6 }
  0x2a   :  { %163 = shalt.err (!%p160_p12)
}
  0x2b   :  { %s164_s24 = scalar_lea.hbm %s219_s1, 128 }
  0x2c   :  { %p165_p13 = scmp.ne.s32.totalorder %s219_s1, %s164_s24  ;;  %p168_p0 = scmp.lt.u32.totalorder %s164_s24, %s219_s1 }
  0x2e   :  { %p170_p1 = pnand %p168_p0, %p165_p13 }
  0x30   :  { %173 = shalt.err (!%p170_p1)
}
  0x31   :  { %120 = dma.vmem_to_hbm [thread:$0]  %s118_s20, 128, %s219_s1, [#allocation4]  }
  0x32   :  { %176 = dma.done.wait [#allocation4], 128  }
  0x33   :  { %177 = vsyncadd [#allocation4], 4294967168 }
  0x34   :  { %124 = vsyncpa [#allocation3], 1 }
  0x35   :  { %125 = vsyncpa [#allocation4], 1 }

</bundles_post_ra>
